<compile_context>
chip_gen: v7x
topology: tpu7x:2x2x1
jax: 0.10.0
libtpu: 0.0.40
codegen_flags: <defaults>
</compile_context>

<pallas_src>
import functools

import jax
import jax.numpy as jnp
from jax.experimental import pallas as pl
from jax.experimental.pallas import tpu as pltpu


def _round_up(n, m):
    return ((n + m - 1) // m) * m


def _mapping_kernel(x_ref, lab_ref, w0x_ref, w0l_ref, b0_ref, w1_ref, b1_ref,
                    o_ref, *, num_layers, feat_total, c0, c1,
                    num_subblocks, rows_per_sub):
    # x_ref:   (TM, z_dim)         f32
    # lab_ref: (TM, num_classes)   f32
    # w0x_ref: (z_dim, WP)  bf16   w0l_ref: (num_classes, WP) bf16
    # w1_ref:  (WP, WP)     bf16   (shared layer, zero-padded rows/cols)
    # b0_ref/b1_ref: (1, WP) f32   o_ref: (TM, WP)
    #
    # The tile is processed as `num_subblocks` independent row sub-blocks so the LLO
    # scheduler can overlap one sub-block's MXU matmul with the other's VPU epilogue
    # (ReLU / scale / bf16-cast / bias-add) in every unrolled layer.
    b0 = b0_ref[...]
    b1 = b1_ref[...]

    # ---- Layer 0 (+ pixel-norm) per sub-block --------------------------------
    hs = []
    for s in range(num_subblocks):
        r0 = s * rows_per_sub
        x = x_ref[pl.ds(r0, rows_per_sub), :].astype(jnp.float32)
        lab = lab_ref[pl.ds(r0, rows_per_sub), :].astype(jnp.float32)

        # PixelNorm over the (virtual) concatenated feature axis.
        ss = (jnp.sum(x * x, axis=-1, keepdims=True)
              + jnp.sum(lab * lab, axis=-1, keepdims=True))
        ms = ss / feat_total
        # Fold EqualizedLinear #0's runtime 1/sqrt(fan_in) into the activations.
        scale = jax.lax.rsqrt(ms + 1e-8) * c0

        xb = (x * scale).astype(jnp.bfloat16)
        lb = (lab * scale).astype(jnp.bfloat16)

        # concat(x, label) @ W0.T + b0  ==  x @ W0_x + label @ W0_lab + b0
        h = (jnp.dot(xb, w0x_ref[...], preferred_element_type=jnp.float32)
             + jnp.dot(lb, w0l_ref[...], preferred_element_type=jnp.float32)
             + b0)
        hs.append(h)

    # ---- Layers 1..num_layers-1 (one SHARED weight/bias) ---------------------
    for _ in range(num_layers - 1):
        new_hs = []
        for h in hs:
            # LeakyReLU(0.0) == ReLU; fold the shared layer's 1/sqrt(fan_in) here.
            hb = (jnp.maximum(h, 0.0) * c1).astype(jnp.bfloat16)
            # Stream the resident VMEM weight directly into the MXU each dot
            # (no full-(WP,WP) value hoisted across the unrolled loop -> no
            # vreg-file spills / redundant VMEM copies).
            new_hs.append(
                jnp.dot(hb, w1_ref[...], preferred_element_type=jnp.float32) + b1)
        hs = new_hs

    for s, h in enumerate(hs):
        o_ref[pl.ds(s * rows_per_sub, rows_per_sub), :] = h.astype(o_ref.dtype)


def prepare_params(params, *, z_dim, num_classes, w_dim):
    """One-time (out-of-hot-path) weight prep: transpose, split, lane-pad, bf16-cast."""
    w0, b0, w1, b1 = params          # w0: (w_dim, z+nc), w1: (w_dim, z_dim), biases (w_dim,)
    assert w0.shape == (w_dim, z_dim + num_classes)
    assert w1.shape == (w_dim, z_dim)
    # The PyTorch `[act, EqualizedLinear(z_dim, w_dim)] * (n-1)` reuses ONE linear for
    # all later layers, which only composes if w_dim == z_dim.
    assert w_dim == z_dim, "shared mapping layer requires w_dim == z_dim"

    WP = _round_up(w_dim, 128)
    pad_out = WP - w_dim

    w0t = jnp.transpose(w0)          # (z+nc, w_dim)
    w0x = w0t[:z_dim]                # (z_dim, w_dim)
    w0l = w0t[z_dim:]                # (num_classes, w_dim)
    w1t = jnp.transpose(w1)          # (z_dim, w_dim)

    w0x = jnp.pad(w0x, ((0, 0), (0, pad_out))).astype(jnp.bfloat16)
    w0l = jnp.pad(w0l, ((0, 0), (0, pad_out))).astype(jnp.bfloat16)
    # Shared layer consumes the WP-wide padded h: pad input rows (zeros) and out cols.
    w1p = jnp.pad(w1t, ((0, WP - z_dim), (0, pad_out))).astype(jnp.bfloat16)
    b0p = jnp.pad(b0, (0, pad_out)).reshape(1, WP).astype(jnp.float32)
    b1p = jnp.pad(b1, (0, pad_out)).reshape(1, WP).astype(jnp.float32)
    return (w0x, w0l, b0p, w1p, b1p)


def mapping_network_labelled(x, label, prepared, *, num_layers, z_dim,
                             num_classes, w_dim):
    """x: (B, z_dim), label: (B, num_classes). Returns (B, w_dim)."""
    w0x, w0l, b0, w1, b1 = prepared
    B = x.shape[0]
    WP = b0.shape[1]
    in0 = z_dim + num_classes        # fan-in of layer 0 (concat width)
    in1 = z_dim                      # fan-in of the shared layer

    # ---- Batch-tile selection -------------------------------------------------
    if B <= 16:
        TM = max(8, _round_up(B, 8))            # tiny batch: single grid step
    elif B <= 256:
        # Guarantee >= 2 grid steps so both v7x TensorCores get work on the
        # "parallel" batch axis; round to 16 so the tile splits into two
        # 8-row-aligned sub-blocks for MXU/VPU interleaving.
        TM = _round_up(pl.cdiv(B, 2), 16)
    else:
        # Large batch: bigger tiles amortize the ~0.35 us/step pipeline cost.
        # Cap at 256 for large w_dim so double-buffered x/out tiles + resident
        # weights stay comfortably inside v7x's 32 MiB scoped VMEM default.
        TM = 512 if WP <= 512 else 256

    BP = _round_up(B, TM)
    if BP != B:
        x = jnp.pad(x, ((0, BP - B), (0, 0)))
        label = jnp.pad(label, ((0, BP - B), (0, 0)))

    num_subblocks = 2 if (TM >= 16 and TM % 16 == 0) else 1
    rows_per_sub = TM // num_subblocks

    kernel = functools.partial(
        _mapping_kernel, num_layers=num_layers, feat_total=float(in0),
        c0=1.0 / (in0 ** 0.5), c1=1.0 / (in1 ** 0.5),
        num_subblocks=num_subblocks, rows_per_sub=rows_per_sub)

    # Weights/biases use constant index_maps -> DMA'd once, VMEM-resident across
    # grid steps. (Single-buffering them via pipeline_mode=pl.Buffered(1) only
    # matters for w_dim >= 1024; skipped here to keep lowering simple.)
    out = pl.pallas_call(
        kernel,
        out_shape=jax.ShapeDtypeStruct((BP, WP), x.dtype),
        grid_spec=pltpu.PrefetchScalarGridSpec(
            num_scalar_prefetch=0,
            grid=(BP // TM,),
            in_specs=[
                pl.BlockSpec((TM, z_dim), lambda i: (i, 0)),        # x tile
                pl.BlockSpec((TM, num_classes), lambda i: (i, 0)),  # label tile
                pl.BlockSpec((z_dim, WP), lambda i: (0, 0)),        # W0_x (resident)
                pl.BlockSpec((num_classes, WP), lambda i: (0, 0)),  # W0_lab (resident)
                pl.BlockSpec((1, WP), lambda i: (0, 0)),            # b0
                pl.BlockSpec((WP, WP), lambda i: (0, 0)),           # W1 (shared, resident)
                pl.BlockSpec((1, WP), lambda i: (0, 0)),            # b1
            ],
            out_specs=pl.BlockSpec((TM, WP), lambda i: (i, 0)),
        ),
        compiler_params=pltpu.CompilerParams(
            dimension_semantics=("parallel",)),
    )(x, label, w0x, w0l, b0, w1, b1)

    return out[:B, :w_dim]


# ------------------------------ references -----------------------------------
def _reference_f32(x, label, params, *, num_layers):
    """Pure-JAX f32 reference mirroring the PyTorch forward exactly."""
    w0, b0, w1, b1 = params
    xc = jnp.concatenate([x, label], axis=-1).astype(jnp.float32)
    xc = xc / jnp.sqrt(jnp.mean(xc ** 2, axis=1, keepdims=True) + 1e-8)
    h = xc @ (w0 * (1.0 / jnp.sqrt(w0.shape[1]))).T + b0
    for _ in range(num_layers - 1):
        h = jnp.maximum(h, 0.0)
        h = h @ (w1 * (1.0 / jnp.sqrt(w1.shape[1]))).T + b1
    return h


def _reference_bf16(x, label, params, *, num_layers):
    """Reference with the same bf16-matmul / f32-accumulate dtype policy as the kernel."""
    w0, b0, w1, b1 = params
    in0, in1 = w0.shape[1], w1.shape[1]
    c0, c1 = 1.0 / (in0 ** 0.5), 1.0 / (in1 ** 0.5)
    xc = jnp.concatenate([x, label], axis=-1).astype(jnp.float32)
    ms = jnp.mean(xc ** 2, axis=1, keepdims=True)
    xb = (xc * (jax.lax.rsqrt(ms + 1e-8) * c0)).astype(jnp.bfloat16)
    h = jnp.dot(xb, w0.T.astype(jnp.bfloat16),
                preferred_element_type=jnp.float32) + b0
    for _ in range(num_layers - 1):
        hb = (jnp.maximum(h, 0.0) * c1).astype(jnp.bfloat16)
        h = jnp.dot(hb, w1.T.astype(jnp.bfloat16),
                    preferred_element_type=jnp.float32) + b1
    return h


def _run_case(key, *, B, z_dim, w_dim, num_classes, num_layers):
    kx, kl, kw0, kw1 = jax.random.split(key, 4)
    x = jax.random.normal(kx, (B, z_dim), dtype=jnp.float32)
    cls = jax.random.randint(kl, (B,), 0, num_classes)
    label = jax.nn.one_hot(cls, num_classes, dtype=jnp.float32)

    # EqualizedLinear init: weight ~ N(0,1), bias = 0 (1/sqrt(fan_in) applied at runtime).
    w0 = jax.random.normal(kw0, (w_dim, z_dim + num_classes), dtype=jnp.float32)
    b0 = jnp.zeros((w_dim,), dtype=jnp.float32)
    w1 = jax.random.normal(kw1, (w_dim, z_dim), dtype=jnp.float32)  # shared layer
    b1 = jnp.zeros((w_dim,), dtype=jnp.float32)
    params = (w0, b0, w1, b1)

    prepared = prepare_params(params, z_dim=z_dim, num_classes=num_classes,
                              w_dim=w_dim)
    out = mapping_network_labelled(
        x, label, prepared, num_layers=num_layers,
        z_dim=z_dim, num_classes=num_classes, w_dim=w_dim)
    out = jax.block_until_ready(out)
    assert out.shape == (B, w_dim)

    # Tight check vs a reference with identical bf16-matmul dtype policy.
    ref_bf16 = _reference_bf16(x, label, params, num_layers=num_layers)
    assert jnp.allclose(out, ref_bf16, atol=2e-2, rtol=2e-2), \
        "mismatch vs bf16-policy reference"

    # Looser check vs the exact f32 PyTorch-semantics reference (bf16 rounding slack).
    ref_f32 = _reference_f32(x, label, params, num_layers=num_layers)
    assert jnp.allclose(out, ref_f32, atol=1e-1, rtol=1e-1), \
        "mismatch vs f32 reference"


if __name__ == "__main__":
    # Small shapes consistent with the module; w_dim must equal z_dim
    # (the PyTorch shared-layer trick requires it for num_layers > 1).
    key = jax.random.PRNGKey(0)
    k1, k2 = jax.random.split(key)

    # Tiny batch: single grid step, single sub-block.
    _run_case(k1, B=8, z_dim=32, w_dim=32, num_classes=8, num_layers=4)
    # Mid batch: exercises the 2-step grid (v7x dual-TC path) + 2 interleaved
    # row sub-blocks per tile (MXU/VPU overlap path).
    _run_case(k2, B=64, z_dim=32, w_dim=32, num_classes=8, num_layers=4)

    print("KERNEL_OK")
</pallas_src>

<mosaic_0001>
module attributes {stable_mosaic.version = 11 : i64} {
  func.func @_mapping_kernel(%arg0: i32, %arg1: memref<8x32xf32, #tpu.memory_space<vmem>>, %arg2: memref<8x8xf32, #tpu.memory_space<vmem>>, %arg3: memref<32x128xbf16, #tpu.memory_space<vmem>>, %arg4: memref<8x128xbf16, #tpu.memory_space<vmem>>, %arg5: memref<1x128xf32, #tpu.memory_space<vmem>>, %arg6: memref<128x128xbf16, #tpu.memory_space<vmem>>, %arg7: memref<1x128xf32, #tpu.memory_space<vmem>>, %arg8: memref<8x128xf32, #tpu.memory_space<vmem>>) attributes {dimension_semantics = [#tpu.dimension_semantics<parallel>], iteration_bounds = array<i64: 1>, scalar_prefetch = 0 : i64, scratch_operands = 0 : i64, tpu.core_type = #tpu.core_type<tc>, window_params = [{transform_indices = @transform_0, window_bounds = array<i64: 8, 32>}, {transform_indices = @transform_1, window_bounds = array<i64: 8, 8>}, {pipeline_mode = #tpu.pipeline_mode<synchronous>, transform_indices = @transform_2, window_bounds = array<i64: 32, 128>}, {pipeline_mode = #tpu.pipeline_mode<synchronous>, transform_indices = @transform_3, window_bounds = array<i64: 8, 128>}, {pipeline_mode = #tpu.pipeline_mode<synchronous>, transform_indices = @transform_4, window_bounds = array<i64: 1, 128>}, {pipeline_mode = #tpu.pipeline_mode<synchronous>, transform_indices = @transform_5, window_bounds = array<i64: 128, 128>}, {pipeline_mode = #tpu.pipeline_mode<synchronous>, transform_indices = @transform_6, window_bounds = array<i64: 1, 128>}, {transform_indices = @transform_7, window_bounds = array<i64: 8, 128>}]} {
    %c0 = arith.constant 0 : index
    %c0_0 = arith.constant 0 : index
    %0 = vector.load %arg5[%c0, %c0_0] : memref<1x128xf32, #tpu.memory_space<vmem>>, vector<1x128xf32>
    %c0_1 = arith.constant 0 : index
    %c0_2 = arith.constant 0 : index
    %1 = vector.load %arg7[%c0_1, %c0_2] : memref<1x128xf32, #tpu.memory_space<vmem>>, vector<1x128xf32>
    %c0_3 = arith.constant 0 : index
    %c0_4 = arith.constant 0 : index
    %2 = vector.load %arg1[%c0_3, %c0_4] : memref<8x32xf32, #tpu.memory_space<vmem>>, vector<8x32xf32>
    %c0_5 = arith.constant 0 : index
    %c0_6 = arith.constant 0 : index
    %3 = vector.load %arg2[%c0_5, %c0_6] : memref<8x8xf32, #tpu.memory_space<vmem>>, vector<8x8xf32>
    %4 = arith.mulf %2, %2 : vector<8x32xf32>
    %cst = arith.constant dense<0.000000e+00> : vector<8xf32>
    %5 = vector.multi_reduction <add>, %4, %cst [1] : vector<8x32xf32> to vector<8xf32>
    %6 = vector.shape_cast %5 : vector<8xf32> to vector<8x1xf32>
    %7 = arith.mulf %3, %3 : vector<8x8xf32>
    %cst_7 = arith.constant dense<0.000000e+00> : vector<8xf32>
    %8 = vector.multi_reduction <add>, %7, %cst_7 [1] : vector<8x8xf32> to vector<8xf32>
    %9 = vector.shape_cast %8 : vector<8xf32> to vector<8x1xf32>
    %10 = arith.addf %6, %9 : vector<8x1xf32>
    %cst_8 = arith.constant 4.000000e+01 : f32
    %11 = vector.broadcast %cst_8 : f32 to vector<8x1xf32>
    %12 = arith.divf %10, %11 : vector<8x1xf32>
    %cst_9 = arith.constant 9.99999993E-9 : f32
    %13 = vector.broadcast %cst_9 : f32 to vector<8x1xf32>
    %14 = arith.addf %12, %13 : vector<8x1xf32>
    %15 = math.rsqrt %14 : vector<8x1xf32>
    %cst_10 = arith.constant 0.158113882 : f32
    %16 = vector.broadcast %cst_10 : f32 to vector<8x1xf32>
    %17 = arith.mulf %15, %16 : vector<8x1xf32>
    %18 = vector.broadcast %17 : vector<8x1xf32> to vector<8x32xf32>
    %19 = arith.mulf %2, %18 : vector<8x32xf32>
    %20 = arith.truncf %19 : vector<8x32xf32> to vector<8x32xbf16>
    %21 = vector.broadcast %17 : vector<8x1xf32> to vector<8x8xf32>
    %22 = arith.mulf %3, %21 : vector<8x8xf32>
    %23 = arith.truncf %22 : vector<8x8xf32> to vector<8x8xbf16>
    %c0_11 = arith.constant 0 : index
    %c0_12 = arith.constant 0 : index
    %24 = vector.load %arg3[%c0_11, %c0_12] : memref<32x128xbf16, #tpu.memory_space<vmem>>, vector<32x128xbf16>
    %cst_13 = arith.constant dense<0.000000e+00> : vector<8x128xf32>
    %25 = tpu.matmul %20, %24, %cst_13 {dimension_numbers = #tpu.dot_dimension_numbers<[1], [0], [0], [1], [0, 0, 1, 1], [], []>} : vector<8x32xbf16>, vector<32x128xbf16>, vector<8x128xf32> -> vector<8x128xf32>
    %c0_14 = arith.constant 0 : index
    %c0_15 = arith.constant 0 : index
    %26 = vector.load %arg4[%c0_14, %c0_15] : memref<8x128xbf16, #tpu.memory_space<vmem>>, vector<8x128xbf16>
    %cst_16 = arith.constant dense<0.000000e+00> : vector<8x128xf32>
    %27 = tpu.matmul %23, %26, %cst_16 {dimension_numbers = #tpu.dot_dimension_numbers<[1], [0], [0], [1], [0, 0, 1, 1], [], []>} : vector<8x8xbf16>, vector<8x128xbf16>, vector<8x128xf32> -> vector<8x128xf32>
    %28 = arith.addf %25, %27 : vector<8x128xf32>
    %29 = vector.broadcast %0 : vector<1x128xf32> to vector<8x128xf32>
    %30 = arith.addf %28, %29 : vector<8x128xf32>
    %cst_17 = arith.constant 0.000000e+00 : f32
    %31 = vector.broadcast %cst_17 : f32 to vector<8x128xf32>
    %32 = arith.maximumf %30, %31 : vector<8x128xf32>
    %cst_18 = arith.constant 0.176776692 : f32
    %33 = vector.broadcast %cst_18 : f32 to vector<8x128xf32>
    %34 = arith.mulf %32, %33 : vector<8x128xf32>
    %35 = arith.truncf %34 : vector<8x128xf32> to vector<8x128xbf16>
    %c0_19 = arith.constant 0 : index
    %c0_20 = arith.constant 0 : index
    %36 = vector.load %arg6[%c0_19, %c0_20] : memref<128x128xbf16, #tpu.memory_space<vmem>>, vector<128x128xbf16>
    %cst_21 = arith.constant dense<0.000000e+00> : vector<8x128xf32>
    %37 = tpu.matmul %35, %36, %cst_21 {dimension_numbers = #tpu.dot_dimension_numbers<[1], [0], [0], [1], [0, 0, 1, 1], [], []>} : vector<8x128xbf16>, vector<128x128xbf16>, vector<8x128xf32> -> vector<8x128xf32>
    %38 = vector.broadcast %1 : vector<1x128xf32> to vector<8x128xf32>
    %39 = arith.addf %37, %38 : vector<8x128xf32>
    %cst_22 = arith.constant 0.000000e+00 : f32
    %40 = vector.broadcast %cst_22 : f32 to vector<8x128xf32>
    %41 = arith.maximumf %39, %40 : vector<8x128xf32>
    %cst_23 = arith.constant 0.176776692 : f32
    %42 = vector.broadcast %cst_23 : f32 to vector<8x128xf32>
    %43 = arith.mulf %41, %42 : vector<8x128xf32>
    %44 = arith.truncf %43 : vector<8x128xf32> to vector<8x128xbf16>
    %c0_24 = arith.constant 0 : index
    %c0_25 = arith.constant 0 : index
    %45 = vector.load %arg6[%c0_24, %c0_25] : memref<128x128xbf16, #tpu.memory_space<vmem>>, vector<128x128xbf16>
    %cst_26 = arith.constant dense<0.000000e+00> : vector<8x128xf32>
    %46 = tpu.matmul %44, %45, %cst_26 {dimension_numbers = #tpu.dot_dimension_numbers<[1], [0], [0], [1], [0, 0, 1, 1], [], []>} : vector<8x128xbf16>, vector<128x128xbf16>, vector<8x128xf32> -> vector<8x128xf32>
    %47 = vector.broadcast %1 : vector<1x128xf32> to vector<8x128xf32>
    %48 = arith.addf %46, %47 : vector<8x128xf32>
    %cst_27 = arith.constant 0.000000e+00 : f32
    %49 = vector.broadcast %cst_27 : f32 to vector<8x128xf32>
    %50 = arith.maximumf %48, %49 : vector<8x128xf32>
    %cst_28 = arith.constant 0.176776692 : f32
    %51 = vector.broadcast %cst_28 : f32 to vector<8x128xf32>
    %52 = arith.mulf %50, %51 : vector<8x128xf32>
    %53 = arith.truncf %52 : vector<8x128xf32> to vector<8x128xbf16>
    %c0_29 = arith.constant 0 : index
    %c0_30 = arith.constant 0 : index
    %54 = vector.load %arg6[%c0_29, %c0_30] : memref<128x128xbf16, #tpu.memory_space<vmem>>, vector<128x128xbf16>
    %cst_31 = arith.constant dense<0.000000e+00> : vector<8x128xf32>
    %55 = tpu.matmul %53, %54, %cst_31 {dimension_numbers = #tpu.dot_dimension_numbers<[1], [0], [0], [1], [0, 0, 1, 1], [], []>} : vector<8x128xbf16>, vector<128x128xbf16>, vector<8x128xf32> -> vector<8x128xf32>
    %56 = vector.broadcast %1 : vector<1x128xf32> to vector<8x128xf32>
    %57 = arith.addf %55, %56 : vector<8x128xf32>
    %c0_32 = arith.constant 0 : index
    %c0_33 = arith.constant 0 : index
    %58 = vector.load %arg8[%c0_32, %c0_33] : memref<8x128xf32, #tpu.memory_space<vmem>>, vector<8x128xf32>
    tpu.vector_store %arg8[%c0_32, %c0_33], %57 {strides = array<i32>} : memref<8x128xf32, #tpu.memory_space<vmem>>, vector<8x128xf32>,
    return
  }
  func.func @transform_0(%arg0: i32) -> (i32, i32) {
    %c0_i32 = arith.constant 0 : i32
    %c0_i32_0 = arith.constant 0 : i32
    return %arg0, %c0_i32 : i32, i32
  }
  func.func @transform_1(%arg0: i32) -> (i32, i32) {
    %c0_i32 = arith.constant 0 : i32
    %c0_i32_0 = arith.constant 0 : i32
    return %arg0, %c0_i32 : i32, i32
  }
  func.func @transform_2(%arg0: i32) -> (i32, i32) {
    %c0_i32 = arith.constant 0 : i32
    %c0_i32_0 = arith.constant 0 : i32
    %c0_i32_1 = arith.constant 0 : i32
    return %c0_i32, %c0_i32_0 : i32, i32
  }
  func.func @transform_3(%arg0: i32) -> (i32, i32) {
    %c0_i32 = arith.constant 0 : i32
    %c0_i32_0 = arith.constant 0 : i32
    %c0_i32_1 = arith.constant 0 : i32
    return %c0_i32, %c0_i32_0 : i32, i32
  }
  func.func @transform_4(%arg0: i32) -> (i32, i32) {
    %c0_i32 = arith.constant 0 : i32
    %c0_i32_0 = arith.constant 0 : i32
    %c0_i32_1 = arith.constant 0 : i32
    return %c0_i32, %c0_i32_0 : i32, i32
  }
  func.func @transform_5(%arg0: i32) -> (i32, i32) {
    %c0_i32 = arith.constant 0 : i32
    %c0_i32_0 = arith.constant 0 : i32
    %c0_i32_1 = arith.constant 0 : i32
    return %c0_i32, %c0_i32_0 : i32, i32
  }
  func.func @transform_6(%arg0: i32) -> (i32, i32) {
    %c0_i32 = arith.constant 0 : i32
    %c0_i32_0 = arith.constant 0 : i32
    %c0_i32_1 = arith.constant 0 : i32
    return %c0_i32, %c0_i32_0 : i32, i32
  }
  func.func @transform_7(%arg0: i32) -> (i32, i32) {
    %c0_i32 = arith.constant 0 : i32
    %c0_i32_0 = arith.constant 0 : i32
    return %arg0, %c0_i32 : i32, i32
  }
}

</mosaic_0001>

<bundles_post_ra>
// kernel: tpu_custom_call.1
= control target key start
LH: loop header
LB: loop body
LE: loop exit
PB: predicated region body
PF: predicated region fallthrough
CT: control target
= control target key end

     0   :  { %12 = vsyncpa [#allocation3], 0  ;;  %s867_s0 = inlined_call_operand.hbm [shape: f32[8,32], index: 0, kind: input, shape index: {}]   ;;  %s868_s1 = inlined_call_operand.hbm [shape: f32[8,8], index: 1, kind: input, shape index: {}]   ;;  %s869_s2 = inlined_call_operand.hbm [shape: bf16[32,128], index: 2, kind: input, shape index: {}]   ;;  %s870_s3 = inlined_call_operand.vmem [shape: bf16[8,128], index: 3, kind: input, shape index: {}]   ;;  %s871_s4 = inlined_call_operand.vmem [shape: f32[1,128], index: 4, kind: input, shape index: {}]   ;;  %s872_s5 = inlined_call_operand.hbm [shape: bf16[128,128], index: 5, kind: input, shape index: {}]   ;;  %s873_s6 = inlined_call_operand.vmem [shape: f32[1,128], index: 6, kind: input, shape index: {}]   ;;  %s874_s7 = inlined_call_operand.hbm [shape: f32[8,128], index: 7, kind: output, shape index: {}]  }
   0x1   :  { %13 = vsyncpa [#allocation6], 0 }
   0x2   :  { %14 = vsyncpa [#allocation9], 0 }
   0x3   :  { %15 = vsyncpa [#allocation4], 0  ;;  %s693_s24 = smov [#allocation5]   ;;  %s694_s26 = smov [#allocation2]  }
   0x4   :  { %s32_s25 = sshll.u32 %s693_s24, 4  ;;  %s22_s27 = sshll.u32 %s694_s26, 4  ;;  %s33_s25 = int_to_ptr.vmem [resolvable:$true] %s32_s25  ;;  %s23_s27 = int_to_ptr.vmem [resolvable:$true] %s22_s27 }
   0x5   :  { %s575_s30 = scalar_lea.hbm %s868_s1, 128 }
   0x6   :  { %p576_p0 = scmp.ne.s32.totalorder %s868_s1, %s575_s30  ;;  %p579_p1 = scmp.lt.u32.totalorder %s575_s30, %s868_s1 }
   0x8   :  { %p581_p2 = pnand %p579_p1, %p576_p0 }
   0xa   :  { %584 = shalt.err (!%p581_p2)
}
   0xb   :  { %s585_s12 = scalar_lea.vmem %s33_s25, 128  ;;  %p590_p4 = scmp.lt.s32.totalorder %s33_s25, %s33_s25 }
   0xc   :  { %p586_p3 = scmp.ne.s32.totalorder %s33_s25, %s585_s12  ;;  %p591_p5 = scmp.lt.s32.totalorder %s585_s12, %s585_s12 }
   0xe   :  { %p592_p6 = por %p591_p5, %p590_p4 }
  0x10   :  { %p593_p7 = pnand %p592_p6, %p586_p3 }
  0x12   :  { %596 = shalt.err (!%p593_p7)
}
  0x13   :  { %35 = dma.hbm_to_vmem [thread:$0]  %s868_s1, 128, %s33_s25, [#allocation6]  }
  0x14   :  { %s597_s17 = scalar_lea.hbm %s867_s0, 128 }
  0x15   :  { %p598_p8 = scmp.ne.s32.totalorder %s867_s0, %s597_s17  ;;  %p601_p9 = scmp.lt.u32.totalorder %s597_s17, %s867_s0 }
  0x17   :  { %p603_p10 = pnand %p601_p9, %p598_p8 }
  0x19   :  { %606 = shalt.err (!%p603_p10)
}
  0x1a   :  { %s607_s22 = scalar_lea.vmem %s23_s27, 128  ;;  %p612_p12 = scmp.lt.s32.totalorder %s23_s27, %s23_s27 }
  0x1b   :  { %p608_p11 = scmp.ne.s32.totalorder %s23_s27, %s607_s22  ;;  %p613_p13 = scmp.lt.s32.totalorder %s607_s22, %s607_s22 }
  0x1d   :  { %p614_p0 = por %p613_p13, %p612_p12 }
  0x1f   :  { %p615_p1 = pnand %p614_p0, %p608_p11 }
  0x21   :  { %618 = shalt.err (!%p615_p1)
}
  0x22   :  { %25 = dma.hbm_to_vmem [thread:$0]  %s867_s0, 128, %s23_s27, [#allocation3]  }
  0x23   :  { %s695_s24 = smov [#allocation7]   ;;  %s619_s29 = scalar_lea.hbm %s869_s2, 256 }
  0x24   :  { %s41_s25 = sshll.u32 %s695_s24, 4  ;;  %p620_p2 = scmp.ne.s32.totalorder %s869_s2, %s619_s29  ;;  %s42_s25 = int_to_ptr.vmem [resolvable:$true] %s41_s25 }
  0x25   :  { %p623_p3 = scmp.lt.u32.totalorder %s619_s29, %s869_s2 }
  0x27   :  { %p625_p4 = pnand %p623_p3, %p620_p2 }
  0x29   :  { %628 = shalt.err (!%p625_p4)
}
  0x2a   :  { %s629_s11 = scalar_lea.vmem %s42_s25, 256  ;;  %p634_p6 = scmp.lt.s32.totalorder %s42_s25, %s42_s25 }
  0x2b   :  { %p630_p5 = scmp.ne.s32.totalorder %s42_s25, %s629_s11  ;;  %p635_p7 = scmp.lt.s32.totalorder %s629_s11, %s629_s11 }
  0x2d   :  { %p636_p8 = por %p635_p7, %p634_p6 }
  0x2f   :  { %p637_p9 = pnand %p636_p8, %p630_p5 }
  0x31   :  { %640 = shalt.err (!%p637_p9)
}
  0x32   :  { %s696_s0 = smov 64   ;;  %s697_s27 = smov 4  }
  0x33   :  { %47 = dma.hbm_to_vmem [thread:$0]  %s869_s2, 256, %s42_s25, [#allocation6], %s696_s0, %s696_s0, %s697_s27  }
  0x34   :  { %s698_s14 = smov [#allocation8]   ;;  %s641_s18 = scalar_lea.hbm %s872_s5, 1024 }
  0x35   :  { %s57_s15 = sshll.u32 %s698_s14, 4  ;;  %p642_p10 = scmp.ne.s32.totalorder %s872_s5, %s641_s18  ;;  %s58_s15 = int_to_ptr.vmem [resolvable:$true] %s57_s15 }
  0x36   :  { %p645_p11 = scmp.lt.u32.totalorder %s641_s18, %s872_s5 }
  0x38   :  { %p647_p12 = pnand %p645_p11, %p642_p10 }
  0x3a   :  { %650 = shalt.err (!%p647_p12)
}
  0x3b   :  { %s651_s1 = scalar_lea.vmem %s58_s15, 1024  ;;  %p656_p0 = scmp.lt.s32.totalorder %s58_s15, %s58_s15 }
  0x3c   :  { %p652_p13 = scmp.ne.s32.totalorder %s58_s15, %s651_s1  ;;  %p657_p1 = scmp.lt.s32.totalorder %s651_s1, %s651_s1 }
  0x3e   :  { %p658_p2 = por %p657_p1, %p656_p0 }
  0x40   :  { %p659_p3 = pnand %p658_p2, %p652_p13 }
  0x42   :  { %662 = shalt.err (!%p659_p3)
}
  0x43   :  { %63 = dma.hbm_to_vmem [thread:$0]  %s872_s5, 1024, %s58_s15, [#allocation9], %s696_s0, %s696_s0, %s697_s27  }
  0x44   :  { %685 = dma.done.wait [#allocation3], 128  }
  0x45   :  { %686 = vsyncadd [#allocation3], 4294967168 }
  0x46   :  { %687 = dma.done.wait [#allocation6], 384  }
  0x47   :  { %688 = vsyncadd [#allocation6], 4294966912 }
  0x48   :  { %689 = dma.done.wait [#allocation9], 1024  }
  0x49   :  { %690 = vsyncadd [#allocation9], 4294966272  ;;  %v81_v0 = vld [vmem:[#allocation2] sm:$0xff]  ;;  %vm84_vm0 = vcmask 261120   ;;  %v82_v1 = vld [vmem:[#allocation5] sm:$0xff]  ;;  %vm89_vm1 = vcmask 64512  }
  0x4a   :  { %v83_v2 = vmul.f32 %v81_v0, %v81_v0  ;;  %v88_v3 = vmul.f32 %v82_v1, %v82_v1  ;;  %v107_v6 = vld [vmem:[%s870_s3] sm:$0xf]  ;;  %vm111_vm2 = vcmask 1043456   ;;  %v699_v7 = vmov 0.0   ;;  %v805_v10 = vld [vmem:[#allocation8 + $0x8] sm:$0xff]   ;;  %v809_v11 = vld [vmem:[#allocation8 + $0x10] sm:$0xff]  }
  0x4b   :  { %480 = vmatprep.subr.bf16.mxu1 %v699_v7  ;;  %v113_v8 = vsel %vm111_vm2, %v107_v6, 0  ;;  %494 = vmatprep.subr.bf16.mxu0 %v699_v7  ;;  %vm700_vm3 = vmmov 0   ;;  %v802_v9 = vld [vmem:[#allocation8] sm:$0xff]   ;;  %v563_v20 = vld [vmem:[#allocation7] sm:$0xff]   ;;  %v564_v22 = vld [vmem:[#allocation7 + $0x8] sm:$0xff]   ;;  %s701_s28 = smov [#allocation10]  }
  0x4c   :  { %v85_v4 = vsel %vm84_vm0, %v83_v2, 0.0  ;;  %v90_v5 = vsel %vm89_vm1, %v88_v3, 0.0  ;;  %481 = vmatpush3.bf16.msra.mxu1 %v113_v8  ;;  %482 = vmatprep.mubr.msk.bf16.mxu1 %vm700_vm3, %v699_v7  ;;  %v568_v25 = vld [vmem:[#allocation8 + $0x18] sm:$0xff]   ;;  %v569_v26 = vld [vmem:[#allocation8 + $0x20] sm:$0xff]   ;;  %v570_v27 = vld [vmem:[#allocation8 + $0x28] sm:$0xff]  }
  0x4d   :  { %86 = vadd.xlane.f32.xlu0 %v85_v4  ;;  %486 = vmatprep.subr.bf16.mxu1 %v699_v7  ;;  %v571_v28 = vld [vmem:[#allocation8 + $0x30] sm:$0xff]   ;;  %v572_v29 = vld [vmem:[#allocation8 + $0x38] sm:$0xff]   ;;  %v438_v34 = vld [vmem:[%s871_s4] ss:$0 sm:$0xff] }
  0x4e   :  { %510 = vmatprep.mubr.msk.bf16.mxu0 %vm700_vm3, %v699_v7  ;;  %495 = vmatpush3.bf16.msra.mxu0 %v802_v9  ;;  %v439_v44 = vld [vmem:[%s873_s6] ss:$0 sm:$0xff]  ;;  %s423_s6 = sshll.u32 %s701_s28, 4  ;;  %s424_s6 = int_to_ptr.vmem [resolvable:$true] %s423_s6 }
  0x4f   :  { %496 = vmatprep.subr.bf16.mxu0 %v699_v7  ;;  %s663_s29 = scalar_lea.vmem %s424_s6, 128  ;;  %p668_p5 = scmp.lt.s32.totalorder %s424_s6, %s424_s6 }
  0x50   :  { %p664_p4 = scmp.ne.s32.totalorder %s424_s6, %s663_s29  ;;  %p669_p6 = scmp.lt.s32.totalorder %s663_s29, %s663_s29 }
  0x51   :  { %91 = vadd.xlane.f32.xlu0 %v90_v5 }
  0x52   :  { %497 = vmatpush3.bf16.msra.mxu0 %v805_v10  ;;  %p670_p7 = por %p669_p6, %p668_p5 }
  0x53   :  { %498 = vmatprep.subr.bf16.mxu0 %v699_v7 }
  0x54   :  { %p671_p8 = pnand %p670_p7, %p664_p4 }
  0x56   :  { %499 = vmatpush3.bf16.msra.mxu0 %v809_v11 }
  0x57   :  { %500 = vmatprep.subr.bf16.mxu0 %v699_v7 }
  0x5a   :  { %501 = vmatpush3.bf16.msra.mxu0 %v568_v25 }
  0x5b   :  { %502 = vmatprep.subr.bf16.mxu0 %v699_v7 }
  0x5e   :  { %503 = vmatpush3.bf16.msra.mxu0 %v569_v26 }
  0x5f   :  { %504 = vmatprep.subr.bf16.mxu0 %v699_v7 }
  0x62   :  { %505 = vmatpush3.bf16.msra.mxu0 %v570_v27 }
  0x63   :  { %506 = vmatprep.subr.bf16.mxu0 %v699_v7 }
  0x66   :  { %507 = vmatpush3.bf16.msra.mxu0 %v571_v28 }
  0x67   :  { %508 = vmatprep.subr.bf16.mxu0 %v699_v7 }
  0x6a   :  { %509 = vmatpush3.bf16.msra.mxu0 %v572_v29 }
  0x6b   :  { %534 = vmatprep.subr.bf16.mxu0 %v699_v7 }
  0xda   :  { %v87_v12 = vpop.xlane.xlu0 %86 }
  0xde   :  { %v92_v13 = vpop.xlane.xlu0 %91 }
  0xdf   :  { %v93_v14 = vadd.f32 %v92_v13, %v87_v12 }
  0xe1   :  { %v95_v15 = vmul.f32 0.025, %v93_v14 }
  0xe3   :  { %v96_v16 = vadd.f32 1e-08, %v95_v15 }
  0xe5   :  { %573 = vrsqrt.f32 %v96_v16 }
  0xef   :  { %v574_v17 = vpop.eup %573 }
  0xf0   :  { %v98_v18 = vmul.f32 0.15811388, %v574_v17 }
  0xf2   :  { %v101_v19 = vmul.f32 %v98_v18, %v82_v1  ;;  %v99_v23 = vmul.f32 %v98_v18, %v81_v0 }
  0xf4   :  { %v102_v21 = vpack.c.bf16 %v101_v19, %v101_v19  ;;  %v100_v24 = vpack.c.bf16 %v99_v23, %v99_v23 }
  0xf6   :  { %483 = vmatmul.mubr.msk.bf16.vlgmr.msra.gmra.mrb[0].mxu1 %vm89_vm1, %v102_v21 }
  0xf7   :  { %487 = vmatpush3.bf16.msra.mxu1 %v563_v20  ;;  %490 = vmatprep.mubr.msk.bf16.mxu1 %vm700_vm3, %v699_v7 }
  0xf8   :  { %488 = vmatprep.subr.bf16.mxu1 %v699_v7 }
  0xfb   :  { %489 = vmatpush3.bf16.msra.mxu1 %v564_v22 }
  0xfc   :  { %514 = vmatprep.subr.bf16.mxu1 %v699_v7 }
  0xfe   :  { %491 = vmatmul.mubr.msk.bf16.vlgmr.msra.gmra.mrb[4].mxu1 %vm84_vm0, %v100_v24 }
  0xff   :  { %515 = vmatpush3.bf16.msra.mxu1 %v802_v9  ;;  %530 = vmatprep.mubr.msk.bf16.mxu1 %vm700_vm3, %v699_v7 }
 0x100   :  { %516 = vmatprep.subr.bf16.mxu1 %v699_v7 }
 0x103   :  { %517 = vmatpush3.bf16.msra.mxu1 %v805_v10 }
 0x104   :  { %518 = vmatprep.subr.bf16.mxu1 %v699_v7 }
 0x107   :  { %519 = vmatpush3.bf16.msra.mxu1 %v809_v11 }
 0x108   :  { %520 = vmatprep.subr.bf16.mxu1 %v699_v7 }
 0x10b   :  { %521 = vmatpush3.bf16.msra.mxu1 %v568_v25 }
 0x10c   :  { %522 = vmatprep.subr.bf16.mxu1 %v699_v7 }
 0x10f   :  { %523 = vmatpush3.bf16.msra.mxu1 %v569_v26 }
 0x110   :  { %524 = vmatprep.subr.bf16.mxu1 %v699_v7 }
 0x113   :  { %525 = vmatpush3.bf16.msra.mxu1 %v570_v27 }
 0x114   :  { %526 = vmatprep.subr.bf16.mxu1 %v699_v7 }
 0x117   :  { %527 = vmatpush3.bf16.msra.mxu1 %v571_v28 }
 0x118   :  { %528 = vmatprep.subr.bf16.mxu1 %v699_v7 }
 0x11b   :  { %529 = vmatpush3.bf16.msra.mxu1 %v572_v29 }
 0x1c9   :  { %v149_v30 = vpop.f32.mrb[0].mxu1 }
 0x1ca   :  { %v484_v31 = vpop.f32.mrb[1].mxu1 }
 0x1cb   :  { %v152_v32 = vpop.f32.mrb[2].mxu1 }
 0x1cc   :  { %v485_v33 = vpop.f32.mrb[3].mxu1 }
 0x1d1   :  { %v204_v35 = vpop.f32.mrb[4].mxu1 }
 0x1d2   :  { %v205_v36 = vadd.f32 %v204_v35, %v149_v30  ;;  %v492_v37 = vpop.f32.mrb[5].mxu1 }
 0x1d3   :  { %v207_v38 = vpop.f32.mrb[6].mxu1 }
 0x1d4   :  { %v216_v39 = vadd.f32 %v438_v34, %v205_v36  ;;  %v493_v40 = vpop.f32.mrb[7].mxu1 }
 0x1d6   :  { %v217_v41 = vmax.f32 %v216_v39, 0.0 }
 0x1d8   :  { %v218_v42 = vmul.f32 0.17677669, %v217_v41 }
 0x1da   :  { %v219_v43 = vpack.c.bf16 %v218_v42, %v218_v42 }
 0x1dc   :  { %511 = vmatmul.mubr.bf16.vlgmr.msra.gmra.mrb[0].mxu0 %v219_v43 }
 0x1dd   :  { %535 = vmatpush3.bf16.msra.mxu0 %v802_v9  ;;  %550 = vmatprep.mubr.msk.bf16.mxu0 %vm700_vm3, %v699_v7 }
 0x1de   :  { %536 = vmatprep.subr.bf16.mxu0 %v699_v7 }
 0x1e1   :  { %537 = vmatpush3.bf16.msra.mxu0 %v805_v10 }
 0x1e2   :  { %538 = vmatprep.subr.bf16.mxu0 %v699_v7 }
 0x1e5   :  { %539 = vmatpush3.bf16.msra.mxu0 %v809_v11 }
 0x1e6   :  { %540 = vmatprep.subr.bf16.mxu0 %v699_v7 }
 0x1e9   :  { %541 = vmatpush3.bf16.msra.mxu0 %v568_v25 }
 0x1ea   :  { %542 = vmatprep.subr.bf16.mxu0 %v699_v7 }
 0x1ed   :  { %543 = vmatpush3.bf16.msra.mxu0 %v569_v26 }
 0x1ee   :  { %544 = vmatprep.subr.bf16.mxu0 %v699_v7 }
 0x1f1   :  { %545 = vmatpush3.bf16.msra.mxu0 %v570_v27 }
 0x1f2   :  { %546 = vmatprep.subr.bf16.mxu0 %v699_v7 }
 0x1f5   :  { %547 = vmatpush3.bf16.msra.mxu0 %v571_v28 }
 0x1f6   :  { %548 = vmatprep.subr.bf16.mxu0 %v699_v7 }
 0x1f9   :  { %549 = vmatpush3.bf16.msra.mxu0 %v572_v29 }
 0x2af   :  { %v324_v45 = vpop.f32.mrb[0].mxu0 }
 0x2b0   :  { %v325_v46 = vadd.f32 %v439_v44, %v324_v45  ;;  %v512_v47 = vpop.f32.mrb[1].mxu0 }
 0x2b1   :  { %v327_v48 = vpop.f32.mrb[2].mxu0 }
 0x2b2   :  { %v330_v49 = vmax.f32 %v325_v46, 0.0  ;;  %v513_v50 = vpop.f32.mrb[3].mxu0 }
 0x2b4   :  { %v331_v51 = vmul.f32 0.17677669, %v330_v49 }
 0x2b6   :  { %v332_v52 = vpack.c.bf16 %v331_v51, %v331_v51 }
 0x2b8   :  { %531 = vmatmul.mubr.bf16.vlgmr.msra.gmra.mrb[8].mxu1 %v332_v52 }
 0x38b   :  { %v367_v53 = vpop.f32.mrb[8].mxu1 }
 0x38c   :  { %v368_v54 = vadd.f32 %v439_v44, %v367_v53  ;;  %v532_v55 = vpop.f32.mrb[9].mxu1 }
 0x38d   :  { %v370_v56 = vpop.f32.mrb[10].mxu1 }
 0x38e   :  { %v373_v57 = vmax.f32 %v368_v54, 0.0  ;;  %v533_v58 = vpop.f32.mrb[11].mxu1 }
 0x390   :  { %v374_v59 = vmul.f32 0.17677669, %v373_v57 }
 0x392   :  { %v375_v60 = vpack.c.bf16 %v374_v59, %v374_v59 }
 0x394   :  { %551 = vmatmul.mubr.bf16.vlgmr.msra.gmra.mrb[4].mxu0 %v375_v60 }
 0x467   :  { %v410_v61 = vpop.f32.mrb[4].mxu0 }
 0x468   :  { %v411_v62 = vadd.f32 %v439_v44, %v410_v61  ;;  %v552_v63 = vpop.f32.mrb[5].mxu0 }
 0x469   :  { %v413_v0 = vpop.f32.mrb[6].mxu0 }
 0x46a   :  { %416 = vst [vmem:[#allocation10] sm:$0xff] %v411_v62  ;;  %v553_v1 = vpop.f32.mrb[7].mxu0 }
 0x46b   :  { %674 = shalt.err (!%p671_p8)
}
 0x46c   :  { %s675_s9 = scalar_lea.hbm %s874_s7, 128 }
 0x46d   :  { %p676_p9 = scmp.ne.s32.totalorder %s874_s7, %s675_s9  ;;  %p679_p10 = scmp.lt.u32.totalorder %s675_s9, %s874_s7 }
 0x46f   :  { %p681_p11 = pnand %p679_p10, %p676_p9 }
 0x471   :  { %684 = shalt.err (!%p681_p11)
}
 0x472   :  { %426 = dma.vmem_to_hbm [thread:$0]  %s424_s6, 128, %s874_s7, [#allocation4]  }
 0x473   :  { %691 = dma.done.wait [#allocation4], 128  }
 0x474   :  { %692 = vsyncadd [#allocation4], 4294967168 }
 0x475   :  { %430 = vsyncpa [#allocation3], 1 }
 0x476   :  { %431 = vsyncpa [#allocation6], 1 }
 0x477   :  { %432 = vsyncpa [#allocation9], 1 }
 0x478   :  { %433 = vsyncpa [#allocation4], 1 }

</bundles_post_ra>
